<compile_context>
chip_gen: v7x
topology: tpu7x:2x2x1
jax: 0.10.0
libtpu: 0.0.40
codegen_flags: <defaults>
</compile_context>

<pallas_src>
import numpy as np
import jax
import jax.numpy as jnp
from jax.experimental import pallas as pl
from jax.experimental.pallas import tpu as pltpu

CORR_SCALE = 11.313708498984761  # == sqrt(128), hard-coded in the PyTorch module
INV_CORR_SCALE = 1.0 / CORR_SCALE


def _round_up(x, m):
    return ((x + m - 1) // m) * m


def _make_pool_matrix_np(h_in, w_in):
    """P (HW_in, HW_out) with 0.25 weights: x_flat @ P == flat(avg_pool2d(x, 2, 2))."""
    h_out, w_out = h_in // 2, w_in // 2
    h = np.arange(2 * h_out)
    w = np.arange(2 * w_out)
    rows = (h[:, None] * w_in + w[None, :]).reshape(-1)
    cols = ((h[:, None] // 2) * w_out + (w[None, :] // 2)).reshape(-1)
    p = np.zeros((h_in * w_in, h_out * w_out), np.float32)
    p[rows, cols] = 0.25
    return p


def _make_combined_pool_matrix_np(hw_shapes, hw0_pad, tail_pad):
    """Q (hw0_pad, tail_pad) = [P1 | P1@P2 | ...], zero-padded to 128 multiples."""
    blocks = []
    cum = None
    for k in range(1, len(hw_shapes)):
        p = _make_pool_matrix_np(*hw_shapes[k - 1])      # (HW_{k-1}, HW_k)
        cum = p if cum is None else cum @ p              # (HW0, HW_k)
        blocks.append(cum)
    q = np.concatenate(blocks, axis=1)                   # (HW0, sum_{k>=1} HW_k)
    out = np.zeros((hw0_pad, tail_pad), np.float32)
    out[: q.shape[0], : q.shape[1]] = q
    return out


def _make_fused_kernel(hw0_pad):
    def kernel(feats_ref, fm0_ref, q_ref, o_ref):
        sb, n, _ = feats_ref.shape
        # Fold 1/sqrt(128) into the (tiny) query features once (f32 VPU).
        feats = feats_ref[...] * INV_CORR_SCALE                      # (SB, N, C)

        # Level 0: per-frame MXU matmul (RHS differs per frame), stored as a
        # dense 128-aligned (N, hw0_pad) write.  SB is small: static unroll.
        for s in range(sb):
            c0 = jnp.dot(feats[s], fm0_ref[s],
                         preferred_element_type=jnp.float32)
            o_ref[s * n:(s + 1) * n, 0:hw0_pad] = c0

        # Levels 1..: pooling commutes with the channel contraction and the
        # pooling matrix is frame-shared, so all deeper levels collapse into
        # ONE (SB*N, hw0_pad) @ (hw0_pad, tail_pad) matmul over the whole frame
        # block, read back from the VMEM-resident output and stored as a single
        # dense 128-aligned block (Q's zero columns provide the lane padding).
        c0_all = o_ref[:, 0:hw0_pad]
        o_ref[:, hw0_pad:] = jnp.dot(c0_all, q_ref[...],
                                     preferred_element_type=jnp.float32)

    return kernel


def _pick_frame_block(S, N, C, hw0_pad, tail_pad):
    """Largest frame block that respects sublane alignment and a VMEM budget.

    Prefers S // 2 (two grid steps -> both v7x TensorCores get work); on
    v5e/v6e the second step is simply another cheap grid iteration.
    """
    budget = 32 * 1024 * 1024  # conservative: within default scoped-VMEM limits

    def fits(sb):
        fm0_b = 2 * sb * C * hw0_pad * 4                 # double-buffered input
        feats_b = 2 * sb * N * C * 4
        out_b = 2 * sb * N * (hw0_pad + tail_pad) * 4
        q_b = 2 * hw0_pad * tail_pad * 4
        return fm0_b + feats_b + out_b + q_b <= budget

    candidates = []
    if S % 2 == 0:
        candidates.append(S // 2)
    candidates += sorted((d for d in range(1, S + 1) if S % d == 0), reverse=True)
    aligned = [sb for sb in candidates if sb == S or (sb * N) % 8 == 0]
    for sb in aligned:
        if fits(sb):
            return sb
    # Nothing fits the conservative budget: take the smallest aligned block and
    # rely on vmem_limit_bytes headroom.
    # TODO(synk): for production PIPs resolutions (e.g. 120x67), add a second
    # "arbitrary" grid axis tiling HW0 so the fm0 block fits v7x's 64 MiB VMEM.
    return min(aligned)


def pips_corrblock2_forward(fmaps, feats, num_levels=4, radius=3):
    """Returns corrs_pyramid: [(S, N, H_k*W_k) for k in range(num_levels)]."""
    del radius  # only used by CorrBlock2.sample(), which forward() never calls
    SC, H, W = fmaps.shape
    S, N, C = feats.shape
    assert SC == S * C, "fmaps first dim must be S*C"
    assert num_levels >= 2

    # Per-level spatial shapes (floor/crop semantics of avg_pool2d(2, stride=2)).
    hw_shapes = [(H, W)]
    for _ in range(num_levels - 1):
        h, w = hw_shapes[-1]
        hw_shapes.append((h // 2, w // 2))
    hw_sizes = [h * w for h, w in hw_shapes]

    hw0 = hw_sizes[0]
    hw0_pad = _round_up(hw0, 128)
    tail = sum(hw_sizes[1:])
    tail_pad = _round_up(tail, 128)
    total_pad = hw0_pad + tail_pad

    # Combined pooling matrix (levels 1.. in one matmul), baked at trace time.
    q_mat = jnp.asarray(_make_combined_pool_matrix_np(hw_shapes, hw0_pad, tail_pad))

    # Level-0 targets, zero-padded to a lane-dense width (no-op when aligned).
    fm0 = fmaps.reshape(S, C, hw0)
    if hw0_pad != hw0:
        fm0 = jnp.pad(fm0, ((0, 0), (0, 0), (0, hw0_pad - hw0)))

    SB = _pick_frame_block(S, N, C, hw0_pad, tail_pad)
    grid = (S // SB,)

    kernel = _make_fused_kernel(hw0_pad)
    slab = pl.pallas_call(
        kernel,
        out_shape=jax.ShapeDtypeStruct((S * N, total_pad), jnp.float32),
        grid=grid,
        in_specs=[
            pl.BlockSpec((SB, N, C), lambda i: (i, 0, 0)),
            pl.BlockSpec((SB, C, hw0_pad), lambda i: (i, 0, 0)),
            pl.BlockSpec((hw0_pad, tail_pad), lambda i: (0, 0)),
        ],
        out_specs=pl.BlockSpec((SB * N, total_pad), lambda i: (i, 0)),
        compiler_params=pltpu.CompilerParams(
            dimension_semantics=("parallel",),
            vmem_limit_bytes=64 * 1024 * 1024,
        ),
        # TODO(synk): on v7x, switch the frame axis to pltpu.CORE_PARALLEL (or
        # pl.core_map over a TensorCore mesh) if a trace shows both grid steps
        # landing on one core; "parallel" is kept here for portability.
    )(feats, fm0, q_mat)

    # Slice the lane-dense slab back into the per-level list (cheap XLA slices).
    slab = slab.reshape(S, N, total_pad)
    corrs_pyramid = [slab[:, :, 0:hw0]]
    off = hw0_pad
    for sz in hw_sizes[1:]:
        corrs_pyramid.append(slab[:, :, off:off + sz])
        off += sz
    return corrs_pyramid


# ---------------------------------------------------------------------------
# Pure-JAX reference (mirrors the PyTorch module exactly, pyramid included)
# ---------------------------------------------------------------------------
def _ref_forward(fmaps, feats, num_levels=4):
    S, N, C = feats.shape
    pyramid = [fmaps]
    cur = fmaps
    for _ in range(num_levels - 1):
        SC, Hc, Wc = cur.shape
        cur = cur[:, : (Hc // 2) * 2, : (Wc // 2) * 2]
        cur = cur.reshape(SC, Hc // 2, 2, Wc // 2, 2).mean(axis=(2, 4))
        pyramid.append(cur)
    outs = []
    for fm in pyramid:
        _, Hi, Wi = fm.shape
        f2 = fm.reshape(S, C, Hi * Wi)
        outs.append(jnp.einsum("snc,sck->snk", feats, f2) / CORR_SCALE)
    return outs


def _run_case(S, C, H, W, N, seed):
    key = jax.random.PRNGKey(seed)
    k1, k2 = jax.random.split(key)
    fmaps = jax.random.normal(k1, (S * C, H, W), dtype=jnp.float32)
    feats = jax.random.normal(k2, (S, N, C), dtype=jnp.float32)

    fwd = jax.jit(pips_corrblock2_forward,
                  static_argnames=("num_levels", "radius"))
    out = fwd(fmaps, feats, num_levels=4, radius=3)
    out = jax.block_until_ready(out)

    ref = _ref_forward(fmaps, feats, num_levels=4)
    assert len(out) == 4
    h, w = H, W
    for lvl, (o, r) in enumerate(zip(out, ref)):
        assert o.shape == (S, N, h * w), (o.shape, (S, N, h * w))
        np.testing.assert_allclose(np.asarray(o), np.asarray(r),
                                   rtol=1e-4, atol=1e-4)
        h, w = h // 2, w // 2


if __name__ == "__main__":
    # Small shapes consistent with the module: S=8 frames, C=128 channels
    # (latent_dim, matches the hard-coded sqrt(128)), H=W=16 spatial, N=8 points.
    _run_case(S=8, C=128, H=16, W=16, N=8, seed=0)
    # Odd / non-128-aligned spatial case exercises the floor-crop pooling and
    # the lane padding path.
    _run_case(S=2, C=128, H=18, W=10, N=8, seed=0)
    print("KERNEL_OK")
</pallas_src>

<mosaic_0001>
module attributes {stable_mosaic.version = 11 : i64} {
  func.func @kernel(%arg0: i32, %arg1: memref<4x8x128xf32, #tpu.memory_space<vmem>>, %arg2: memref<4x128x256xf32, #tpu.memory_space<vmem>>, %arg3: memref<256x128xf32, #tpu.memory_space<vmem>>, %arg4: memref<32x384xf32, #tpu.memory_space<vmem>>) attributes {dimension_semantics = [#tpu.dimension_semantics<parallel>], iteration_bounds = array<i64: 2>, scalar_prefetch = 0 : i64, scratch_operands = 0 : i64, tpu.core_type = #tpu.core_type<tc>, window_params = [{transform_indices = @transform_0, window_bounds = array<i64: 4, 8, 128>}, {transform_indices = @transform_1, window_bounds = array<i64: 4, 128, 256>}, {pipeline_mode = #tpu.pipeline_mode<synchronous>, transform_indices = @transform_2, window_bounds = array<i64: 256, 128>}, {transform_indices = @transform_3, window_bounds = array<i64: 32, 384>}]} {
    %c0 = arith.constant 0 : index
    %c0_0 = arith.constant 0 : index
    %c0_1 = arith.constant 0 : index
    %0 = vector.load %arg1[%c0, %c0_0, %c0_1] : memref<4x8x128xf32, #tpu.memory_space<vmem>>, vector<4x8x128xf32>
    %cst = arith.constant 0.0883883461 : f32
    %1 = vector.broadcast %cst : f32 to vector<4x8x128xf32>
    %2 = arith.mulf %0, %1 : vector<4x8x128xf32>
    %3 = vector.extract_strided_slice %2 {offsets = [0, 0, 0], sizes = [1, 8, 128], strides = [1, 1, 1]} : vector<4x8x128xf32> to vector<1x8x128xf32>
    %4 = vector.shape_cast %3 : vector<1x8x128xf32> to vector<8x128xf32>
    %c0_2 = arith.constant 0 : index
    %c0_3 = arith.constant 0 : index
    %c0_4 = arith.constant 0 : index
    %5 = vector.load %arg2[%c0_2, %c0_3, %c0_4] : memref<4x128x256xf32, #tpu.memory_space<vmem>>, vector<1x128x256xf32>
    %6 = vector.shape_cast %5 : vector<1x128x256xf32> to vector<128x256xf32>
    %cst_5 = arith.constant dense<0.000000e+00> : vector<8x256xf32>
    %7 = tpu.matmul %4, %6, %cst_5 {dimension_numbers = #tpu.dot_dimension_numbers<[1], [0], [0], [1], [0, 0, 1, 1], [], []>} : vector<8x128xf32>, vector<128x256xf32>, vector<8x256xf32> -> vector<8x256xf32>
    %c0_6 = arith.constant 0 : index
    %c0_7 = arith.constant 0 : index
    %8 = vector.load %arg4[%c0_6, %c0_7] : memref<32x384xf32, #tpu.memory_space<vmem>>, vector<8x256xf32>
    tpu.vector_store %arg4[%c0_6, %c0_7], %7 {strides = array<i32>} : memref<32x384xf32, #tpu.memory_space<vmem>>, vector<8x256xf32>,
    %9 = vector.extract_strided_slice %2 {offsets = [1, 0, 0], sizes = [1, 8, 128], strides = [1, 1, 1]} : vector<4x8x128xf32> to vector<1x8x128xf32>
    %10 = vector.shape_cast %9 : vector<1x8x128xf32> to vector<8x128xf32>
    %c1 = arith.constant 1 : index
    %c0_8 = arith.constant 0 : index
    %c0_9 = arith.constant 0 : index
    %11 = vector.load %arg2[%c1, %c0_8, %c0_9] : memref<4x128x256xf32, #tpu.memory_space<vmem>>, vector<1x128x256xf32>
    %12 = vector.shape_cast %11 : vector<1x128x256xf32> to vector<128x256xf32>
    %cst_10 = arith.constant dense<0.000000e+00> : vector<8x256xf32>
    %13 = tpu.matmul %10, %12, %cst_10 {dimension_numbers = #tpu.dot_dimension_numbers<[1], [0], [0], [1], [0, 0, 1, 1], [], []>} : vector<8x128xf32>, vector<128x256xf32>, vector<8x256xf32> -> vector<8x256xf32>
    %c8 = arith.constant 8 : index
    %c0_11 = arith.constant 0 : index
    %14 = vector.load %arg4[%c8, %c0_11] : memref<32x384xf32, #tpu.memory_space<vmem>>, vector<8x256xf32>
    tpu.vector_store %arg4[%c8, %c0_11], %13 {strides = array<i32>} : memref<32x384xf32, #tpu.memory_space<vmem>>, vector<8x256xf32>,
    %15 = vector.extract_strided_slice %2 {offsets = [2, 0, 0], sizes = [1, 8, 128], strides = [1, 1, 1]} : vector<4x8x128xf32> to vector<1x8x128xf32>
    %16 = vector.shape_cast %15 : vector<1x8x128xf32> to vector<8x128xf32>
    %c2 = arith.constant 2 : index
    %c0_12 = arith.constant 0 : index
    %c0_13 = arith.constant 0 : index
    %17 = vector.load %arg2[%c2, %c0_12, %c0_13] : memref<4x128x256xf32, #tpu.memory_space<vmem>>, vector<1x128x256xf32>
    %18 = vector.shape_cast %17 : vector<1x128x256xf32> to vector<128x256xf32>
    %cst_14 = arith.constant dense<0.000000e+00> : vector<8x256xf32>
    %19 = tpu.matmul %16, %18, %cst_14 {dimension_numbers = #tpu.dot_dimension_numbers<[1], [0], [0], [1], [0, 0, 1, 1], [], []>} : vector<8x128xf32>, vector<128x256xf32>, vector<8x256xf32> -> vector<8x256xf32>
    %c16 = arith.constant 16 : index
    %c0_15 = arith.constant 0 : index
    %20 = vector.load %arg4[%c16, %c0_15] : memref<32x384xf32, #tpu.memory_space<vmem>>, vector<8x256xf32>
    tpu.vector_store %arg4[%c16, %c0_15], %19 {strides = array<i32>} : memref<32x384xf32, #tpu.memory_space<vmem>>, vector<8x256xf32>,
    %21 = vector.extract_strided_slice %2 {offsets = [3, 0, 0], sizes = [1, 8, 128], strides = [1, 1, 1]} : vector<4x8x128xf32> to vector<1x8x128xf32>
    %22 = vector.shape_cast %21 : vector<1x8x128xf32> to vector<8x128xf32>
    %c3 = arith.constant 3 : index
    %c0_16 = arith.constant 0 : index
    %c0_17 = arith.constant 0 : index
    %23 = vector.load %arg2[%c3, %c0_16, %c0_17] : memref<4x128x256xf32, #tpu.memory_space<vmem>>, vector<1x128x256xf32>
    %24 = vector.shape_cast %23 : vector<1x128x256xf32> to vector<128x256xf32>
    %cst_18 = arith.constant dense<0.000000e+00> : vector<8x256xf32>
    %25 = tpu.matmul %22, %24, %cst_18 {dimension_numbers = #tpu.dot_dimension_numbers<[1], [0], [0], [1], [0, 0, 1, 1], [], []>} : vector<8x128xf32>, vector<128x256xf32>, vector<8x256xf32> -> vector<8x256xf32>
    %c24 = arith.constant 24 : index
    %c0_19 = arith.constant 0 : index
    %26 = vector.load %arg4[%c24, %c0_19] : memref<32x384xf32, #tpu.memory_space<vmem>>, vector<8x256xf32>
    tpu.vector_store %arg4[%c24, %c0_19], %25 {strides = array<i32>} : memref<32x384xf32, #tpu.memory_space<vmem>>, vector<8x256xf32>,
    %c0_20 = arith.constant 0 : index
    %c0_21 = arith.constant 0 : index
    %27 = vector.load %arg4[%c0_20, %c0_21] : memref<32x384xf32, #tpu.memory_space<vmem>>, vector<32x256xf32>
    %c0_22 = arith.constant 0 : index
    %c0_23 = arith.constant 0 : index
    %28 = vector.load %arg3[%c0_22, %c0_23] : memref<256x128xf32, #tpu.memory_space<vmem>>, vector<256x128xf32>
    %cst_24 = arith.constant dense<0.000000e+00> : vector<32x128xf32>
    %29 = tpu.matmul %27, %28, %cst_24 {dimension_numbers = #tpu.dot_dimension_numbers<[1], [0], [0], [1], [0, 0, 1, 1], [], []>} : vector<32x256xf32>, vector<256x128xf32>, vector<32x128xf32> -> vector<32x128xf32>
    %c0_25 = arith.constant 0 : index
    %c256 = arith.constant 256 : index
    %30 = vector.load %arg4[%c0_25, %c256] : memref<32x384xf32, #tpu.memory_space<vmem>>, vector<32x128xf32>
    tpu.vector_store %arg4[%c0_25, %c256], %29 {strides = array<i32>} : memref<32x384xf32, #tpu.memory_space<vmem>>, vector<32x128xf32>,
    return
  }
  func.func @transform_0(%arg0: i32) -> (i32, i32, i32) {
    %c0_i32 = arith.constant 0 : i32
    %c0_i32_0 = arith.constant 0 : i32
    %c0_i32_1 = arith.constant 0 : i32
    return %arg0, %c0_i32, %c0_i32_0 : i32, i32, i32
  }
  func.func @transform_1(%arg0: i32) -> (i32, i32, i32) {
    %c0_i32 = arith.constant 0 : i32
    %c0_i32_0 = arith.constant 0 : i32
    %c0_i32_1 = arith.constant 0 : i32
    return %arg0, %c0_i32, %c0_i32_0 : i32, i32, i32
  }
  func.func @transform_2(%arg0: i32) -> (i32, i32) {
    %c0_i32 = arith.constant 0 : i32
    %c0_i32_0 = arith.constant 0 : i32
    %c0_i32_1 = arith.constant 0 : i32
    return %c0_i32, %c0_i32_0 : i32, i32
  }
  func.func @transform_3(%arg0: i32) -> (i32, i32) {
    %c0_i32 = arith.constant 0 : i32
    %c0_i32_0 = arith.constant 0 : i32
    return %arg0, %c0_i32 : i32, i32
  }
}

</mosaic_0001>

<bundles_post_ra>
// kernel: pips_corrblock2_forward.1
= control target key start
LH: loop header
LB: loop body
LE: loop exit
PB: predicated region body
PF: predicated region fallthrough
CT: control target
= control target key end

     0   :  { %s1926_s0 = inlined_call_operand.hbm [shape: f32[8,8,128], index: 0, kind: input, shape index: {}]   ;;  %s1927_s1 = inlined_call_operand.hbm [shape: f32[8,128,256], index: 1, kind: input, shape index: {}]   ;;  %s1928_s2 = inlined_call_operand.hbm [shape: f32[256,128], index: 2, kind: input, shape index: {}]   ;;  %s1929_s3 = inlined_call_operand.hbm [shape: f32[64,384], index: 3, kind: output, shape index: {}]  }
   0x1   :  { %1933 = sst [smem:[#allocation13_spill]] %s1926_s0 }
   0x2   :  { %8 = vsyncpa [#allocation3], 0 }
   0x3   :  { %10 = vsyncpa [#allocation3 + $0x1], 0 }
   0x4   :  { %11 = vsyncpa [#allocation6], 0 }
   0x5   :  { %13 = vsyncpa [#allocation6 + $0x1], 0 }
   0x6   :  { %14 = vsyncpa [#allocation4], 0 }
   0x7   :  { %16 = vsyncpa [#allocation4 + $0x1], 0  ;;  %s1516_s12 = smov 0   ;;  %s1518_s13 = smov 0  }
   0x8   :  { %s1520_s14 = smov 0   ;;  %s1522_s15 = smov 0  }
   0x9 LB: > { %s1537_s16 = sadd.s32 4294967295, %s1483_s15   ;;  %s927_s17 = sadd.s32 4294967294, %s1483_s15   ;;  %s1483_s15 = sphi %s1522_s15, %s1951_s15   ;;  %s1479_s14 = sphi %s1520_s14, %s1950_s14   ;;  %s1475_s13 = sphi %s1518_s13, %s1949_s13   ;;  %s1471_s12 = sphi %s1516_s12, %s1948_s12  }
   0xa   : > { %p42_p0 = scmp.ne.s32.totalorder %s1475_s13, %s1471_s12  ;;  %p1930_p1 = scmp.eq.s32.totalorder %s1537_s16, 0 }
   0xb   : > { %p119_p3 = scmp.eq.s32.totalorder %s927_s17, 1  ;;  %p928_p5 = scmp.ge.s32.totalorder %s1483_s15, 1 }
   0xc   : > { %p1546_p4 = por %p1930_p1, %p42_p0  ;;  %p126_p7 = scmp.lt.s32.totalorder %s1483_s15, 3 }
   0xd   : > { %p1551_p6 = por %p119_p3, %p42_p0  ;;  %s1485_s21 = smov [#allocation7]  }
   0xe   : > { %s1934_s18 = scalar_select %p1546_p4, 1, 0 }
   0xf   : > { %s1935_s19 = scalar_select %p1551_p6, 1, 0 }
  0x10   : > { %p1556_p8 = pnand %p928_p5, %p126_p7  ;;  %s138_s22 = sshll.u32 %s1485_s21, 4  ;;  %s1560_s22 = int_to_ptr.vmem [resolvable:$true] %s138_s22 }
  0x11   : > { %s1572_s24 = sadd.s32 1, %s1483_s15   ;;  %s29_s25 = sadd.s32 1, %s1479_s14 }
  0x12   : > { %s1936_s20 = scalar_select %p1556_p8, 1, 0 }
  0x13   : > { %p1262_p9 = pneg %p1556_p8  ;;  %s26_s26 = ssub.s32 %s1483_s15, %s1572_s24 }
  0x14   : > { %s1321_s29 = scalar_lea.hbm %s1928_s2, 4096 }
  0x15   : > { %p1567_p11 = pnand %p1262_p9, %p1930_p1  ;;  %p1322_p12 = scmp.ne.s32.totalorder %s1928_s2, %s1321_s29 }
  0x16   : > { %p1328_p5 = scmp.lt.u32.totalorder %s1321_s29, %s1928_s2 }
  0x17   : > { %p1323_p13 = pneg %p1567_p11 }
  0x19   : > { %p1324_p0 = pnand %p1323_p13, %p1322_p12 }
  0x1b   : > { %p1325_p3 = pneg %p1324_p0 }
  0x1d   : > { %p1330_p7 = pnand %p1328_p5, %p1325_p3 }
  0x1f   : > { %1333 = shalt.err (!%p1330_p7)
}
  0x20   : > { %s1334_s7 = scalar_lea.vmem %s1560_s22, 4096  ;;  %p1342_p2 = scmp.lt.s32.totalorder %s1560_s22, %s1560_s22 }
  0x21   : > { %p1335_p9 = scmp.ne.s32.totalorder %s1560_s22, %s1334_s7  ;;  %p1343_p6 = scmp.lt.s32.totalorder %s1334_s7, %s1334_s7 }
  0x23   : > { %p1337_p10 = pnand %p1335_p9, %p1323_p13  ;;  %p1344_p4 = por %p1343_p6, %p1342_p2 }
  0x25   : > { %p1338_p1 = pneg %p1337_p10 }
  0x27   : > { %p1345_p8 = pnand %p1344_p4, %p1338_p1 }
  0x29   : > { %1348 = shalt.err (!%p1345_p8)
}
  0x2a   : > { %s1486_s8 = smov 128   ;;  %s1487_s9 = smov 8  }
  0x2b   : > { %1265 = dma.hbm_to_vmem [thread:$0]  (!%p1567_p11), %s1928_s2, 4096, %s1560_s22, [#allocation6], %s1486_s8, %s1486_s8, %s1487_s9  }
  0x2c   : > { %p27_p1 = scmp.eq.s32.totalorder %s26_s26, 0  ;;  %p36_p2 = scmp.ne.s32.totalorder %s1479_s14, %s1475_s13 }
  0x2d   : > { %p37_p4 = scmp.eq.s32.totalorder %s1483_s15, 0  ;;  %p1278_p6 = scmp.lt.s32.totalorder %s1483_s15, 2 }
  0x2e   : > { %s1606_s17 = scalar_select %p27_p1, %s1479_s14, %s29_s25  }
  0x2f   : > { %p38_p8 = por %p37_p4, %p36_p2  ;;  %p1938_p10 = scmp.eq.s32.totalorder %s1537_s16, 1 }
  0x30   : > { %s1615_s23 = sand.u32 1, %s1479_s14   ;;  %s1043_s27 = sshll.u32 %s1483_s15, 9 }
  0x31   : > { %p1610_p12 = por %p1938_p10, %p36_p2  ;;  %s931_s28 = sshll.u32 %s1615_s23, 5 }
  0x32   : > { %s1940_s0 = sld [smem:[#allocation13_spill]]  ;;  %s156_s25 = scalar_lea.vmem [#allocation2], %s931_s28 }
  0x33   : > { %s163_s30 = sshll.u32 %s156_s25, 4  ;;  %p1624_p11 = pnand %p1278_p6, %p38_p8  ;;  %s1628_s30 = int_to_ptr.vmem [resolvable:$true] %s163_s30 }
  0x34   : > { %s173_s5 = sand.u32 1, %s1483_s15   ;;  %s153_s6 = scalar_lea.sflag [#allocation3], %s1615_s23 }
  0x35   : > { %p1351_p0 = pneg %p1624_p11 }
  0x38   : > { %s1622_s26 = scalar_lea.hbm %s1940_s0, %s1043_s27  ;;  %s1354_s27 = scalar_lea.hbm %s1940_s0, 1024 }
  0x39   : > { %s1349_s7 = scalar_lea.hbm %s1622_s26, 512  ;;  %p1355_p7 = scmp.lt.u32.totalorder %s1622_s26, %s1940_s0 }
  0x3a   : > { %p1350_p13 = scmp.ne.s32.totalorder %s1622_s26, %s1349_s7  ;;  %p1356_p9 = scmp.lt.u32.totalorder %s1354_s27, %s1349_s7 }
  0x3b   : > { %p1358_p2 = scmp.lt.u32.totalorder %s1349_s7, %s1622_s26 }
  0x3c   : > { %p1352_p3 = pnand %p1351_p0, %p1350_p13  ;;  %p1357_p1 = por %p1356_p9, %p1355_p7 }
  0x3e   : > { %p1353_p5 = pneg %p1352_p3  ;;  %p1359_p4 = por %p1358_p2, %p1357_p1 }
  0x40   : > { %p1360_p6 = pnand %p1359_p4, %p1353_p5 }
  0x42   : > { %1363 = shalt.err (!%p1360_p6)
}
  0x43   : > { %s1364_s29 = scalar_lea.vmem %s1628_s30, 512  ;;  %s1488_s25 = smov [#allocation2]  }
  0x44   : > { %p1365_p8 = scmp.ne.s32.totalorder %s1628_s30, %s1364_s29  ;;  %s1369_s10 = sshll.u32 %s1488_s25, 4  ;;  %s1370_s10 = int_to_ptr.vmem [resolvable:$false] %s1369_s10 }
  0x45   : > { %s1371_s11 = scalar_lea.vmem %s1370_s10, 1024  ;;  %p1372_p3 = scmp.lt.s32.totalorder %s1628_s30, %s1370_s10 }
  0x46   : > { %p1367_p10 = pnand %p1365_p8, %p1351_p0  ;;  %p1373_p7 = scmp.lt.s32.totalorder %s1371_s11, %s1364_s29 }
  0x48   : > { %p1368_p13 = pneg %p1367_p10  ;;  %p1374_p9 = por %p1373_p7, %p1372_p3 }
  0x4a   : > { %p1375_p1 = pnand %p1374_p9, %p1368_p13 }
  0x4c   : > { %1378 = shalt.err (!%p1375_p1)
}
  0x4d   : > { %1269 = dma.hbm_to_vmem [thread:$0]  (!%p1624_p11), %s1622_s26, 512, %s1628_s30, %s153_s6, %s1486_s8, %s1486_s8, %s1487_s9  }
  0x4e   : > { %s934_s7 = sshll.u32 %s1615_s23, 10  ;;  %s1045_s27 = sshll.u32 %s1483_s15, 14 }
  0x4f   : > { %s1667_s29 = scalar_lea.hbm %s1927_s1, %s1045_s27  ;;  %s177_s25 = scalar_lea.vmem [#allocation5], %s934_s7 }
  0x50   : > { %s185_s10 = sshll.u32 %s177_s25, 4  ;;  %s1673_s11 = scalar_lea.sflag [#allocation6], %s173_s5  ;;  %s1669_s10 = int_to_ptr.vmem [resolvable:$true] %s185_s10 }
  0x51   : > { %s1379_s0 = scalar_lea.hbm %s1667_s29, 16384  ;;  %s1384_s23 = scalar_lea.hbm %s1927_s1, 32768 }
  0x52   : > { %p1380_p5 = scmp.ne.s32.totalorder %s1667_s29, %s1379_s0  ;;  %p1385_p6 = scmp.lt.u32.totalorder %s1667_s29, %s1927_s1 }
  0x53   : > { %p1386_p8 = scmp.lt.u32.totalorder %s1384_s23, %s1379_s0  ;;  %p1388_p13 = scmp.lt.u32.totalorder %s1379_s0, %s1667_s29 }
  0x54   : > { %p1382_p2 = pnand %p1380_p5, %p1351_p0 }
  0x55   : > { %p1387_p10 = por %p1386_p8, %p1385_p6 }
  0x56   : > { %p1383_p4 = pneg %p1382_p2 }
  0x57   : > { %p1389_p3 = por %p1388_p13, %p1387_p10 }
  0x59   : > { %p1390_p7 = pnand %p1389_p3, %p1383_p4 }
  0x5b   : > { %1393 = shalt.err (!%p1390_p7)
}
  0x5c   : > { %s1394_s5 = scalar_lea.vmem %s1669_s10, 16384  ;;  %s1489_s6 = smov [#allocation5]  }
  0x5d   : > { %p1395_p9 = scmp.ne.s32.totalorder %s1669_s10, %s1394_s5  ;;  %s1399_s7 = sshll.u32 %s1489_s6, 4  ;;  %s1400_s7 = int_to_ptr.vmem [resolvable:$false] %s1399_s7 }
  0x5e   : > { %s1401_s27 = scalar_lea.vmem %s1400_s7, 32768  ;;  %p1402_p2 = scmp.lt.s32.totalorder %s1669_s10, %s1400_s7 }
  0x5f   : > { %p1397_p1 = pnand %p1395_p9, %p1351_p0  ;;  %p1403_p6 = scmp.lt.s32.totalorder %s1401_s27, %s1394_s5 }
  0x61   : > { %p1398_p5 = pneg %p1397_p1  ;;  %p1404_p8 = por %p1403_p6, %p1402_p2 }
  0x63   : > { %p1405_p10 = pnand %p1404_p8, %p1398_p5 }
  0x65   : > { %1408 = shalt.err (!%p1405_p10)
}
  0x66   : > { %s1490_s0 = smov 256   ;;  %s1491_s28 = smov 16  }
  0x67   : > { %1272 = dma.hbm_to_vmem [thread:$0]  (!%p1624_p11), %s1667_s29, 16384, %s1669_s10, %s1673_s11, %s1490_s0, %s1490_s0, %s1491_s28  }
  0x68   : > { %p1942_p0 = scmp.ne.s32.totalorder %s1936_s20, 0 }
  0x69   : > { %s1702_s22 = sand.u32 (!%p1942_p0), 1, %s1475_s13   ;;  %p1943_p4 = scmp.ne.s32.totalorder (!%p1942_p0), %s1934_s18, 0 }
  0x6a   : > { %197 = sbr.rel (%p1942_p0) target bundleno = 663 (0x297), region = 32  ;;  %s939_s25 = sshll.u32 (!%p1942_p0), %s1702_s22, 5 }
  0x6b   : > { %s200_s8 = scalar_lea.sflag (!%p1942_p0), [#allocation3], %s1702_s22  ;;  %s1706_s9 = scalar_lea.vmem (!%p1942_p0), [#allocation2], %s939_s25 }
  0x71   : > { %1454 = dma.done.wait (%p1943_p4), %s200_s8, 512  }
  0x72   : > { %1456 = vsyncadd (%p1943_p4), %s200_s8, 4294966784  ;;  %s208_s20 = sand.u32 1, %s1537_s16   ;;  %s940_s4 = sshll.u32 %s1702_s22, 10 }
  0x73   : > { %s209_s29 = scalar_lea.sflag [#allocation6], %s208_s20  ;;  %s1714_s10 = scalar_lea.vmem [#allocation5], %s940_s4 }
  0x74   : > { %1458 = dma.done.wait (%p1943_p4), %s209_s29, 16384  }
  0x75   : > { %1460 = vsyncadd (%p1943_p4), %s209_s29, 4294950912  ;;  %p1944_p11 = scmp.eq.s32.totalorder %s1537_s16, 0 }
  0x77   : > { %1462 = dma.done.wait (%p1944_p11), [#allocation6], 4096   ;;  %p1945_p13 = pmov %p1944_p11 }
  0x78   : > { %v1492_v0 = vmov 0.0   ;;  %v256_v1 = vld [vmem:[%s1714_s10 + $0x8] sm:$0xff]  ;;  %v258_v2 = vld [vmem:[%s1714_s10 + $0x18] sm:$0xff]  ;;  %v255_v3 = vld [vmem:[%s1714_s10] sm:$0xff]  ;;  %s1250_s18 = smul.u32 96, %s1702_s22  ;;  %s808_s7 = scalar_lea.sflag [#allocation4], %s1702_s22 }
  0x79   : > { %1464 = vsyncadd (%p1945_p13), [#allocation6], 4294963200  ;;  %351 = vmatprep.mubr.f32.mxu1 %v1492_v0  ;;  %563 = vmatprep.mubr.f32.mxu0 %v1492_v0  ;;  %v1090_v4 = vpack.c.bf16 %v258_v2, %v256_v1  ;;  %v257_v5 = vld [vmem:[%s1714_s10 + $0x10] sm:$0xff]  ;;  %v260_v6 = vld [vmem:[%s1714_s10 + $0x28] sm:$0xff]  ;;  %s1251_s23 = smul.u32 1536, %s1537_s16  ;;  %s1493_s16 = smov [#allocation8]  }
  0x7a   : > { %v262_v7 = vld [vmem:[%s1714_s10 + $0x38] sm:$0xff]  ;;  %v1092_v8 = vpack.c.bf16 %v257_v5, %v255_v3  ;;  %v259_v10 = vld [vmem:[%s1714_s10 + $0x20] sm:$0xff]  ;;  %v261_v11 = vld [vmem:[%s1714_s10 + $0x30] sm:$0xff]  ;;  %s1861_s11 = scalar_lea.vmem [#allocation8], %s1250_s18  ;;  %s1413_s0 = sshll.u32 %s1493_s16, 4  ;;  %s1414_s0 = int_to_ptr.vmem [resolvable:$false] %s1413_s0 }
  0x7b   : > { %v1094_v9 = vpack.c.bf16 %v262_v7, %v260_v6  ;;  %v264_v12 = vld [vmem:[%s1714_s10 + $0x48] sm:$0xff]  ;;  %1091 = vmatprep.subr.bf16.mxu1 %v1090_v4  ;;  %v266_v13 = vld [vmem:[%s1714_s10 + $0x58] sm:$0xff]  ;;  %v1096_v14 = vpack.c.bf16 %v261_v11, %v259_v10  ;;  %v263_v16 = vld [vmem:[%s1714_s10 + $0x40] sm:$0xff]  ;;  %s822_s26 = sshll.u32 %s1861_s11, 4  ;;  %s1879_s6 = scalar_lea.hbm %s1929_s3, %s1251_s23  ;;  %s1881_s26 = int_to_ptr.vmem [resolvable:$true] %s822_s26 }
  0x7c   : > { %1093 = vmatpush1.bf16.msra.mxu1 %v1092_v8  ;;  %v1098_v15 = vpack.c.bf16 %v266_v13, %v264_v12  ;;  %v265_v17 = vld [vmem:[%s1714_s10 + $0x50] sm:$0xff]  ;;  %v268_v18 = vld [vmem:[%s1714_s10 + $0x68] sm:$0xff]  ;;  %v270_v19 = vld [vmem:[%s1714_s10 + $0x78] sm:$0xff]  ;;  %s1409_s27 = scalar_lea.vmem %s1881_s26, 1536  ;;  %s1415_s28 = scalar_lea.vmem %s1414_s0, 3072 }
  0x7d   : > { %1095 = vmatprep.subr.bf16.mxu1 %v1094_v9  ;;  %v1100_v20 = vpack.c.bf16 %v265_v17, %v263_v16  ;;  %v1102_v21 = vpack.c.bf16 %v270_v19, %v268_v18  ;;  %v267_v22 = vld [vmem:[%s1714_s10 + $0x60] sm:$0xff]  ;;  %v269_v23 = vld [vmem:[%s1714_s10 + $0x70] sm:$0xff]  ;;  %v272_v24 = vld [vmem:[%s1714_s10 + $0x88] sm:$0xff]  ;;  %p1410_p3 = scmp.ne.s32.totalorder %s1881_s26, %s1409_s27  ;;  %p1416_p1 = scmp.lt.s32.totalorder %s1881_s26, %s1414_s0 }
  0x7e   : > { %v274_v25 = vld [vmem:[%s1714_s10 + $0x98] sm:$0xff]  ;;  %v1104_v26 = vpack.c.bf16 %v269_v23, %v267_v22  ;;  %v271_v28 = vld [vmem:[%s1714_s10 + $0x80] sm:$0xff]  ;;  %v273_v29 = vld [vmem:[%s1714_s10 + $0x90] sm:$0xff]  ;;  %p1417_p5 = scmp.lt.s32.totalorder %s1415_s28, %s1409_s27 }
  0x7f   : > { %v1106_v27 = vpack.c.bf16 %v274_v25, %v272_v24  ;;  %v276_v30 = vld [vmem:[%s1714_s10 + $0xa8] sm:$0xff]  ;;  %v278_v31 = vld [vmem:[%s1714_s10 + $0xb8] sm:$0xff]  ;;  %v1108_v32 = vpack.c.bf16 %v273_v29, %v271_v28  ;;  %v275_v34 = vld [vmem:[%s1714_s10 + $0xa0] sm:$0xff]  ;;  %p1411_p7 = pnand %p1410_p3, %p1610_p12 }
  0x80   : > { %1097 = vmatpush1.bf16.msra.mxu1 %v1096_v14  ;;  %v1110_v33 = vpack.c.bf16 %v278_v31, %v276_v30  ;;  %v277_v35 = vld [vmem:[%s1714_s10 + $0xb0] sm:$0xff]  ;;  %v280_v36 = vld [vmem:[%s1714_s10 + $0xc8] sm:$0xff]  ;;  %v282_v37 = vld [vmem:[%s1714_s10 + $0xd8] sm:$0xff]  ;;  %p1418_p2 = por %p1417_p5, %p1416_p1 }
  0x81   : > { %1099 = vmatprep.subr.bf16.mxu1 %v1098_v15  ;;  %v1112_v38 = vpack.c.bf16 %v277_v35, %v275_v34  ;;  %v279_v39 = vld [vmem:[%s1714_s10 + $0xc0] sm:$0xff]  ;;  %v975_v40 = vld [vmem:[%s1714_s10 + $0x208] sm:$0xff]  ;;  %v977_v41 = vld [vmem:[%s1714_s10 + $0x218] sm:$0xff]  ;;  %v1114_v42 = vpack.c.bf16 %v282_v37, %v280_v36  ;;  %p1412_p9 = pneg %p1411_p7 }
  0x82   : > { %v281_v43 = vld [vmem:[%s1714_s10 + $0xd0] sm:$0xff]  ;;  %v1154_v44 = vpack.c.bf16 %v977_v41, %v975_v40  ;;  %v974_v45 = vld [vmem:[%s1714_s10 + $0x200] sm:$0xff]  ;;  %v284_v47 = vld [vmem:[%s1714_s10 + $0xe8] sm:$0xff] }
  0x83   : > { %v976_v46 = vld [vmem:[%s1714_s10 + $0x210] sm:$0xff]  ;;  %v286_v48 = vld [vmem:[%s1714_s10 + $0xf8] sm:$0xff]  ;;  %v979_v50 = vld [vmem:[%s1714_s10 + $0x228] sm:$0xff]  ;;  %v1116_v53 = vpack.c.bf16 %v281_v43, %v279_v39  ;;  %p1419_p6 = pnand %p1418_p2, %p1412_p9 }
  0x84   : > { %1101 = vmatpush1.bf16.msra.mxu1 %v1100_v20  ;;  %v1156_v49 = vpack.c.bf16 %v976_v46, %v974_v45  ;;  %1155 = vmatprep.subr.bf16.mxu0 %v1154_v44  ;;  %v981_v51 = vld [vmem:[%s1714_s10 + $0x238] sm:$0xff]  ;;  %v978_v52 = vld [vmem:[%s1714_s10 + $0x220] sm:$0xff]  ;;  %v980_v56 = vld [vmem:[%s1714_s10 + $0x230] sm:$0xff]  ;;  %v1118_v57 = vpack.c.bf16 %v286_v48, %v284_v47 }
  0x85   : > { %1103 = vmatprep.subr.bf16.mxu1 %v1102_v21  ;;  %v283_v54 = vld [vmem:[%s1714_s10 + $0xe0] sm:$0xff]  ;;  %v1158_v55 = vpack.c.bf16 %v981_v51, %v979_v50  ;;  %v285_v58 = vld [vmem:[%s1714_s10 + $0xf0] sm:$0xff]  ;;  %v1160_v59 = vpack.c.bf16 %v980_v56, %v978_v52  ;;  %v983_v60 = vld [vmem:[%s1714_s10 + $0x248] sm:$0xff] }
  0x86   : > { %1157 = vmatpush1.bf16.msra.mxu0 %v1156_v49  ;;  %v985_v61 = vld [vmem:[%s1714_s10 + $0x258] sm:$0xff]  ;;  %v943_v62 = vld [vmem:[%s1714_s10 + $0x108] sm:$0xff]  ;;  %v982_v2 = vld [vmem:[%s1714_s10 + $0x240] sm:$0xff]  ;;  %v1120_v4 = vpack.c.bf16 %v285_v58, %v283_v54 }
  0x87   : > { %v945_v63 = vld [vmem:[%s1714_s10 + $0x118] sm:$0xff]  ;;  %1159 = vmatprep.subr.bf16.mxu0 %v1158_v55  ;;  %v1162_v1 = vpack.c.bf16 %v985_v61, %v983_v60  ;;  %v984_v3 = vld [vmem:[%s1714_s10 + $0x250] sm:$0xff]  ;;  %v247_v5 = vld [vmem:[%s1706_s9] sm:$0xff] }
  0x88   : > { %1105 = vmatpush1.bf16.msra.mxu1 %v1104_v26  ;;  %v1164_v6 = vpack.c.bf16 %v984_v3, %v982_v2  ;;  %v987_v7 = vld [vmem:[%s1714_s10 + $0x268] sm:$0xff]  ;;  %v989_v8 = vld [vmem:[%s1714_s10 + $0x278] sm:$0xff]  ;;  %v1122_v9 = vpack.c.bf16 %v945_v63, %v943_v62  ;;  %v942_v10 = vld [vmem:[%s1714_s10 + $0x100] sm:$0xff]  ;;  %v251_v17 = vmul.f32 0.088388346, %v247_v5 }
  0x89   : > { %1107 = vmatprep.subr.bf16.mxu1 %v1106_v27  ;;  %v944_v11 = vld [vmem:[%s1714_s10 + $0x110] sm:$0xff]  ;;  %v947_v12 = vld [vmem:[%s1714_s10 + $0x128] sm:$0xff]  ;;  %v1166_v13 = vpack.c.bf16 %v989_v8, %v987_v7  ;;  %v949_v14 = vld [vmem:[%s1714_s10 + $0x138] sm:$0xff] }
  0x8a   : > { %1161 = vmatpush1.bf16.msra.mxu0 %v1160_v59  ;;  %v986_v15 = vld [vmem:[%s1714_s10 + $0x260] sm:$0xff]  ;;  %v988_v16 = vld [vmem:[%s1714_s10 + $0x270] sm:$0xff]  ;;  %v991_v18 = vld [vmem:[%s1714_s10 + $0x288] sm:$0xff]  ;;  %v1124_v20 = vpack.c.bf16 %v944_v11, %v942_v10  ;;  %v1126_v21 = vpack.c.bf16 %v949_v14, %v947_v12 }
  0x8b   : > { %1163 = vmatprep.subr.bf16.mxu0 %v1162_v1  ;;  %v993_v19 = vld [vmem:[%s1714_s10 + $0x298] sm:$0xff]  ;;  %v946_v22 = vld [vmem:[%s1714_s10 + $0x120] sm:$0xff]  ;;  %v948_v23 = vld [vmem:[%s1714_s10 + $0x130] sm:$0xff]  ;;  %v1168_v25 = vpack.c.bf16 %v988_v16, %v986_v15 }
  0x8c   : > { %1109 = vmatpush1.bf16.msra.mxu1 %v1108_v32  ;;  %v951_v24 = vld [vmem:[%s1714_s10 + $0x148] sm:$0xff]  ;;  %v953_v26 = vld [vmem:[%s1714_s10 + $0x158] sm:$0xff]  ;;  %v1170_v27 = vpack.c.bf16 %v993_v19, %v991_v18  ;;  %v990_v28 = vld [vmem:[%s1714_s10 + $0x280] sm:$0xff]  ;;  %v1128_v32 = vpack.c.bf16 %v948_v23, %v946_v22 }
  0x8d   : > { %1111 = vmatprep.subr.bf16.mxu1 %v1110_v33  ;;  %v992_v29 = vld [vmem:[%s1714_s10 + $0x290] sm:$0xff]  ;;  %v995_v30 = vld [vmem:[%s1714_s10 + $0x2a8] sm:$0xff]  ;;  %v997_v31 = vld [vmem:[%s1714_s10 + $0x2b8] sm:$0xff]  ;;  %v1130_v33 = vpack.c.bf16 %v953_v26, %v951_v24 }
  0x8e   : > { %1165 = vmatpush1.bf16.msra.mxu0 %v1164_v6  ;;  %v950_v34 = vld [vmem:[%s1714_s10 + $0x140] sm:$0xff]  ;;  %v952_v35 = vld [vmem:[%s1714_s10 + $0x150] sm:$0xff]  ;;  %v955_v36 = vld [vmem:[%s1714_s10 + $0x168] sm:$0xff]  ;;  %v1172_v37 = vpack.c.bf16 %v992_v29, %v990_v28  ;;  %v1174_v39 = vpack.c.bf16 %v997_v31, %v995_v30 }
  0x8f   : > { %1167 = vmatprep.subr.bf16.mxu0 %v1166_v13  ;;  %v994_v40 = vld [vmem:[%s1714_s10 + $0x2a0] sm:$0xff]  ;;  %v996_v41 = vld [vmem:[%s1714_s10 + $0x2b0] sm:$0xff]  ;;  %v1001_v43 = vld [vmem:[%s1714_s10 + $0x2d8] sm:$0xff]  ;;  %v1132_v44 = vpack.c.bf16 %v952_v35, %v950_v34 }
  0x90   : > { %1113 = vmatpush1.bf16.msra.mxu1 %v1112_v38  ;;  %v957_v38 = vld [vmem:[%s1714_s10 + $0x178] sm:$0xff]  ;;  %v954_v46 = vld [vmem:[%s1714_s10 + $0x160] sm:$0xff]  ;;  %v956_v47 = vld [vmem:[%s1714_s10 + $0x170] sm:$0xff]  ;;  %v1176_v49 = vpack.c.bf16 %v996_v41, %v994_v40 }
  0x91   : > { %1115 = vmatprep.subr.bf16.mxu1 %v1114_v42  ;;  %v999_v42 = vld [vmem:[%s1714_s10 + $0x2c8] sm:$0xff]  ;;  %v1134_v45 = vpack.c.bf16 %v957_v38, %v955_v36  ;;  %v961_v50 = vld [vmem:[%s1714_s10 + $0x198] sm:$0xff]  ;;  %v998_v52 = vld [vmem:[%s1714_s10 + $0x2c0] sm:$0xff]  ;;  %v1136_v56 = vpack.c.bf16 %v956_v47, %v954_v46 }
  0x92   : > { %1169 = vmatpush1.bf16.msra.mxu0 %v1168_v25  ;;  %v959_v48 = vld [vmem:[%s1714_s10 + $0x188] sm:$0xff]  ;;  %v1178_v51 = vpack.c.bf16 %v1001_v43, %v999_v42  ;;  %v1005_v55 = vld [vmem:[%s1714_s10 + $0x2f8] sm:$0xff]  ;;  %v958_v58 = vld [vmem:[%s1714_s10 + $0x180] sm:$0xff] }
  0x93   : > { %1171 = vmatprep.subr.bf16.mxu0 %v1170_v27  ;;  %v1003_v54 = vld [vmem:[%s1714_s10 + $0x2e8] sm:$0xff]  ;;  %v960_v59 = vld [vmem:[%s1714_s10 + $0x190] sm:$0xff]  ;;  %v965_v62 = vld [vmem:[%s1714_s10 + $0x1b8] sm:$0xff] }
  0x94   : > { %1117 = vmatpush1.bf16.msra.mxu1 %v1116_v53  ;;  %v1000_v53 = vld [vmem:[%s1714_s10 + $0x2d0] sm:$0xff]  ;;  %v963_v60 = vld [vmem:[%s1714_s10 + $0x1a8] sm:$0xff]  ;;  %v1182_v63 = vpack.c.bf16 %v1005_v55, %v1003_v54  ;;  %v1002_v1 = vld [vmem:[%s1714_s10 + $0x2e0] sm:$0xff]  ;;  %v1140_v5 = vpack.c.bf16 %v960_v59, %v958_v58 }
  0x95   : > { %1119 = vmatprep.subr.bf16.mxu1 %v1118_v57  ;;  %v1138_v57 = vpack.c.bf16 %v961_v50, %v959_v48  ;;  %v1180_v61 = vpack.c.bf16 %v1000_v53, %v998_v52  ;;  %v1004_v2 = vld [vmem:[%s1714_s10 + $0x2f0] sm:$0xff]  ;;  %v702_v3 = vld [vmem:[#allocation7 + $0x80] sm:$0xff]  ;;  %v1142_v7 = vpack.c.bf16 %v965_v62, %v963_v60  ;;  %v969_v12 = vld [vmem:[%s1714_s10 + $0x1d8] sm:$0xff] }
  0x96   : > { %1173 = vmatpush1.bf16.msra.mxu0 %v1172_v37  ;;  %v962_v6 = vld [vmem:[%s1714_s10 + $0x1a0] sm:$0xff]  ;;  %v964_v8 = vld [vmem:[%s1714_s10 + $0x1b0] sm:$0xff]  ;;  %v1184_v10 = vpack.c.bf16 %v1004_v2, %v1002_v1  ;;  %v687_v15 = vld [vmem:[#allocation7 + $0x8] sm:$0xff] }
  0x97   : > { %1175 = vmatprep.subr.bf16.mxu0 %v1174_v39  ;;  %v249_v11 = vld [vmem:[%s1706_s9 + $0x10] sm:$0xff]  ;;  %v686_v14 = vld [vmem:[#allocation7] sm:$0xff]  ;;  %v1144_v18 = vpack.c.bf16 %v964_v8, %v962_v6  ;;  %v971_v23 = vld [vmem:[%s1714_s10 + $0x1e8] sm:$0xff] }
  0x98   : > { %1121 = vmatpush1.bf16.msra.mxu1 %v1120_v4  ;;  %v703_v4 = vld [vmem:[#allocation7 + $0x88] sm:$0xff]  ;;  %v704_v16 = vld [vmem:[#allocation7 + $0x90] sm:$0xff]  ;;  %v253_v19 = vmul.f32 0.088388346, %v249_v11  ;;  %v1220_v24 = vpack.c.bf16 %v687_v15, %v686_v14  ;;  %v973_v25 = vld [vmem:[%s1714_s10 + $0x1f8] sm:$0xff] }
  0x99   : > { %1123 = vmatprep.subr.bf16.mxu1 %v1122_v9  ;;  %v967_v9 = vld [vmem:[%s1714_s10 + $0x1c8] sm:$0xff]  ;;  %v1218_v13 = vpack.c.bf16 %v703_v4, %v702_v3  ;;  %v968_v22 = vld [vmem:[%s1714_s10 + $0x1d0] sm:$0xff]  ;;  %v689_v28 = vld [vmem:[#allocation7 + $0x18] sm:$0xff] }
  0x9a   : > { %1177 = vmatpush1.bf16.msra.mxu0 %v1176_v49  ;;  %v688_v27 = vld [vmem:[#allocation7 + $0x10] sm:$0xff]  ;;  %v706_v29 = vld [vmem:[#allocation7 + $0xa0] sm:$0xff]  ;;  %v707_v30 = vld [vmem:[#allocation7 + $0xa8] sm:$0xff] }
  0x9b   : > { %352 = vmatmul.mubr.f32.vlgmr.msra.gmra.mrb[0].mxu1 %v251_v17  ;;  %1179 = vmatprep.subr.bf16.mxu0 %v1178_v51  ;;  %v705_v17 = vld [vmem:[#allocation7 + $0x98] sm:$0xff]  ;;  %v972_v34 = vld [vmem:[%s1714_s10 + $0x1f0] sm:$0xff]  ;;  %v1007_v35 = vld [vmem:[%s1714_s10 + $0x308] sm:$0xff]  ;;  %v1224_v36 = vpack.c.bf16 %v689_v28, %v688_v27  ;;  %v1226_v38 = vpack.c.bf16 %v707_v30, %v706_v29 }
  0x9c   : > { %1125 = vmatpush1.bf16.msra.mxu1 %v1124_v20  ;;  %457 = vmatprep.mubr.f32.mxu1 %v1492_v0  ;;  %v1146_v20 = vpack.c.bf16 %v969_v12, %v967_v9  ;;  %v1222_v26 = vpack.c.bf16 %v705_v17, %v704_v16  ;;  %v1009_v37 = vld [vmem:[%s1714_s10 + $0x318] sm:$0xff]  ;;  %v690_v39 = vld [vmem:[#allocation7 + $0x20] sm:$0xff]  ;;  %v691_v40 = vld [vmem:[#allocation7 + $0x28] sm:$0xff] }
  0x9d   : > { %1127 = vmatprep.subr.bf16.mxu1 %v1126_v21  ;;  %v966_v21 = vld [vmem:[%s1714_s10 + $0x1c0] sm:$0xff]  ;;  %v708_v41 = vld [vmem:[#allocation7 + $0xb0] sm:$0xff]  ;;  %v709_v42 = vld [vmem:[#allocation7 + $0xb8] sm:$0xff]  ;;  %v1228_v49 = vpack.c.bf16 %v691_v40, %v690_v39 }
  0x9e   : > { %1181 = vmatpush1.bf16.msra.mxu0 %v1180_v61  ;;  %v1148_v31 = vpack.c.bf16 %v968_v22, %v966_v21  ;;  %v1006_v46 = vld [vmem:[%s1714_s10 + $0x300] sm:$0xff]  ;;  %v1008_v47 = vld [vmem:[%s1714_s10 + $0x310] sm:$0xff]  ;;  %v1011_v48 = vld [vmem:[%s1714_s10 + $0x328] sm:$0xff]  ;;  %v1230_v51 = vpack.c.bf16 %v709_v42, %v708_v41 }
  0x9f   : > { %1183 = vmatprep.subr.bf16.mxu0 %v1182_v63  ;;  %v1013_v50 = vld [vmem:[%s1714_s10 + $0x338] sm:$0xff]  ;;  %v692_v52 = vld [vmem:[#allocation7 + $0x30] sm:$0xff]  ;;  %v710_v55 = vld [vmem:[#allocation7 + $0xc0] sm:$0xff] }
  0xa0   : > { %1129 = vmatpush1.bf16.msra.mxu1 %v1128_v32  ;;  %v1150_v32 = vpack.c.bf16 %v973_v25, %v971_v23  ;;  %v693_v53 = vld [vmem:[#allocation7 + $0x38] sm:$0xff]  ;;  %v1190_v58 = vpack.c.bf16 %v1013_v50, %v1011_v48  ;;  %v1010_v59 = vld [vmem:[%s1714_s10 + $0x320] sm:$0xff]  ;;  %v1012_v60 = vld [vmem:[%s1714_s10 + $0x330] sm:$0xff] }
  0xa1   : > { %1131 = vmatprep.subr.bf16.mxu1 %v1130_v33  ;;  %v970_v33 = vld [vmem:[%s1714_s10 + $0x1e0] sm:$0xff]  ;;  %v1015_v61 = vld [vmem:[%s1714_s10 + $0x348] sm:$0xff]  ;;  %v1232_v62 = vpack.c.bf16 %v693_v53, %v692_v52  ;;  %v1017_v63 = vld [vmem:[%s1714_s10 + $0x358] sm:$0xff]  ;;  %v1192_v6 = vpack.c.bf16 %v1012_v60, %v1010_v59 }
  0xa2   : > { %1185 = vmatpush1.bf16.msra.mxu0 %v1184_v10  ;;  %v1152_v43 = vpack.c.bf16 %v972_v34, %v970_v33  ;;  %v694_v2 = vld [vmem:[#allocation7 + $0x40] sm:$0xff]  ;;  %v695_v3 = vld [vmem:[#allocation7 + $0x48] sm:$0xff]  ;;  %v712_v4 = vld [vmem:[#allocation7 + $0xd0] sm:$0xff] }
  0xa3   : > { %1219 = vmatprep.subr.bf16.mxu0 %v1218_v13  ;;  %v1014_v8 = vld [vmem:[%s1714_s10 + $0x340] sm:$0xff]  ;;  %v1016_v9 = vld [vmem:[%s1714_s10 + $0x350] sm:$0xff]  ;;  %v1236_v10 = vpack.c.bf16 %v695_v3, %v694_v2  ;;  %v1019_v11 = vld [vmem:[%s1714_s10 + $0x368] sm:$0xff] }
  0xa4   : > { %1133 = vmatpush1.bf16.msra.mxu1 %v1132_v44  ;;  %v248_v44 = vld [vmem:[%s1706_s9 + $0x8] sm:$0xff]  ;;  %v1021_v12 = vld [vmem:[%s1714_s10 + $0x378] sm:$0xff]  ;;  %v1196_v14 = vpack.c.bf16 %v1016_v9, %v1014_v8  ;;  %v1018_v15 = vld [vmem:[%s1714_s10 + $0x360] sm:$0xff] }
  0xa5   : > { %1135 = vmatprep.subr.bf16.mxu1 %v1134_v45  ;;  %564 = vmatmul.mubr.f32.vlgmr.msra.gmra.mrb[0].mxu0 %v253_v19  ;;  %v1186_v45 = vpack.c.bf16 %v1009_v37, %v1007_v35  ;;  %v252_v54 = vmul.f32 0.088388346, %v248_v44  ;;  %v1020_v16 = vld [vmem:[%s1714_s10 + $0x370] sm:$0xff]  ;;  %v1023_v17 = vld [vmem:[%s1714_s10 + $0x388] sm:$0xff]  ;;  %v1022_v21 = vld [vmem:[%s1714_s10 + $0x380] sm:$0xff] }
  0xa6   : > { %1221 = vmatpush3.bf16.msra.mxu0 %v1220_v24  ;;  %v1200_v19 = vpack.c.bf16 %v1020_v16, %v1018_v15  ;;  %v1024_v22 = vld [vmem:[%s1714_s10 + $0x390] sm:$0xff]  ;;  %v1027_v23 = vld [vmem:[%s1714_s10 + $0x3a8] sm:$0xff]  ;;  %v1029_v24 = vld [vmem:[%s1714_s10 + $0x3b8] sm:$0xff] }
  0xa7   : > { %1223 = vmatprep.subr.bf16.mxu0 %v1222_v26  ;;  %v1204_v25 = vpack.c.bf16 %v1024_v22, %v1022_v21  ;;  %v1206_v26 = vpack.c.bf16 %v1029_v24, %v1027_v23  ;;  %v1026_v27 = vld [vmem:[%s1714_s10 + $0x3a0] sm:$0xff]  ;;  %v1028_v28 = vld [vmem:[%s1714_s10 + $0x3b0] sm:$0xff]  ;;  %v1031_v29 = vld [vmem:[%s1714_s10 + $0x3c8] sm:$0xff] }
  0xa8   : > { %1137 = vmatpush1.bf16.msra.mxu1 %v1136_v56  ;;  %v711_v56 = vld [vmem:[#allocation7 + $0xc8] sm:$0xff]  ;;  %v1033_v30 = vld [vmem:[%s1714_s10 + $0x3d8] sm:$0xff]  ;;  %v1030_v33 = vld [vmem:[%s1714_s10 + $0x3c0] sm:$0xff] }
  0xa9   : > { %1139 = vmatprep.subr.bf16.mxu1 %v1138_v57  ;;  %v1188_v57 = vpack.c.bf16 %v1008_v47, %v1006_v46  ;;  %v1234_v1 = vpack.c.bf16 %v711_v56, %v710_v55  ;;  %v1032_v34 = vld [vmem:[%s1714_s10 + $0x3d0] sm:$0xff]  ;;  %v1035_v35 = vld [vmem:[%s1714_s10 + $0x3e8] sm:$0xff]  ;;  %v1034_v39 = vld [vmem:[%s1714_s10 + $0x3e0] sm:$0xff] }
  0xaa   : > { %1225 = vmatpush3.bf16.msra.mxu0 %v1224_v36  ;;  %v1037_v36 = vld [vmem:[%s1714_s10 + $0x3f8] sm:$0xff]  ;;  %v1212_v37 = vpack.c.bf16 %v1032_v34, %v1030_v33  ;;  %v1036_v40 = vld [vmem:[%s1714_s10 + $0x3f0] sm:$0xff]  ;;  %v714_v47 = vld [vmem:[#allocation7 + $0xe0] sm:$0xff] }
  0xab   : > { %1227 = vmatprep.subr.bf16.mxu0 %v1226_v38  ;;  %v1214_v38 = vpack.c.bf16 %v1037_v36, %v1035_v35  ;;  %v1216_v41 = vpack.c.bf16 %v1036_v40, %v1034_v39  ;;  %v250_v42 = vld [vmem:[%s1706_s9 + $0x18] sm:$0xff]  ;;  %v696_v44 = vld [vmem:[#allocation7 + $0x50] sm:$0xff]  ;;  %v715_v48 = vld [vmem:[#allocation7 + $0xe8] sm:$0xff] }
  0xac   : > { %1141 = vmatpush1.bf16.msra.mxu1 %v1140_v5  ;;  %v713_v5 = vld [vmem:[#allocation7 + $0xd8] sm:$0xff]  ;;  %v698_v50 = vld [vmem:[#allocation7 + $0x60] sm:$0xff]  ;;  %v716_v53 = vld [vmem:[#allocation7 + $0xf0] sm:$0xff] }
  0xad   : > { %1143 = vmatprep.subr.bf16.mxu1 %v1142_v7  ;;  %v1194_v7 = vpack.c.bf16 %v1017_v63, %v1015_v61  ;;  %v1238_v13 = vpack.c.bf16 %v713_v5, %v712_v4  ;;  %v700_v56 = vld [vmem:[#allocation7 + $0x70] sm:$0xff] }
  0xae   : > { %1229 = vmatpush3.bf16.msra.mxu0 %v1228_v49  ;;  %v1242_v49 = vpack.c.bf16 %v715_v48, %v714_v47 }
  0xaf   : > { %1231 = vmatprep.subr.bf16.mxu0 %v1230_v51  ;;  %v699_v51 = vld [vmem:[#allocation7 + $0x68] sm:$0xff] }
  0xb0   : > { %1145 = vmatpush1.bf16.msra.mxu1 %v1144_v18  ;;  %v1025_v18 = vld [vmem:[%s1714_s10 + $0x398] sm:$0xff]  ;;  %v1244_v52 = vpack.c.bf16 %v699_v51, %v698_v50 }
  0xb1   : > { %1147 = vmatprep.subr.bf16.mxu1 %v1146_v20  ;;  %v1202_v20 = vpack.c.bf16 %v1025_v18, %v1023_v17 }
  0xb2   : > { %1233 = vmatpush3.bf16.msra.mxu0 %v1232_v62 }
  0xb3   : > { %1235 = vmatprep.subr.bf16.mxu0 %v1234_v1 }
  0xb4   : > { %1149 = vmatpush1.bf16.msra.mxu1 %v1148_v31  ;;  %v1208_v31 = vpack.c.bf16 %v1028_v28, %v1026_v27 }
  0xb5   : > { %1151 = vmatprep.subr.bf16.mxu1 %v1150_v32  ;;  %v1210_v32 = vpack.c.bf16 %v1033_v30, %v1031_v29 }
  0xb6   : > { %1237 = vmatpush3.bf16.msra.mxu0 %v1236_v10 }
  0xb7   : > { %1239 = vmatprep.subr.bf16.mxu0 %v1238_v13 }
  0xb8   : > { %1153 = vmatpush1.bf16.msra.mxu1 %v1152_v43  ;;  %v254_v43 = vmul.f32 0.088388346, %v250_v42 }
  0xb9   : > { %1187 = vmatprep.subr.bf16.mxu1 %v1186_v45  ;;  %v697_v45 = vld [vmem:[#allocation7 + $0x58] sm:$0xff] }
  0xba   : > { %v1240_v46 = vpack.c.bf16 %v697_v45, %v696_v44 }
  0xbb   : > { %458 = vmatmul.mubr.f32.vlgmr.msra.gmra.mrb[2].mxu1 %v252_v54  ;;  %v717_v54 = vld [vmem:[#allocation7 + $0xf8] sm:$0xff] }
  0xbc   : > { %1189 = vmatpush1.bf16.msra.mxu1 %v1188_v57  ;;  %669 = vmatprep.mubr.f32.mxu1 %v1492_v0  ;;  %v1198_v0 = vpack.c.bf16 %v1021_v12, %v1019_v11  ;;  %v1246_v55 = vpack.c.bf16 %v717_v54, %v716_v53  ;;  %v701_v57 = vld [vmem:[#allocation7 + $0x78] sm:$0xff] }
  0xbd   : > { %1191 = vmatprep.subr.bf16.mxu1 %v1190_v58  ;;  %1241 = vmatpush3.bf16.msra.mxu0 %v1240_v46  ;;  %v1248_v58 = vpack.c.bf16 %v701_v57, %v700_v56 }
  0xbe   : > { %1243 = vmatprep.subr.bf16.mxu0 %v1242_v49 }
  0xc0   : > { %1193 = vmatpush1.bf16.msra.mxu1 %v1192_v6 }
  0xc1   : > { %1195 = vmatprep.subr.bf16.mxu1 %v1194_v7  ;;  %1245 = vmatpush3.bf16.msra.mxu0 %v1244_v52 }
  0xc2   : > { %1247 = vmatprep.subr.bf16.mxu0 %v1246_v55 }
  0xc4   : > { %1197 = vmatpush1.bf16.msra.mxu1 %v1196_v14 }
  0xc5   : > { %1199 = vmatprep.subr.bf16.mxu1 %v1198_v0  ;;  %1249 = vmatpush3.bf16.msra.mxu0 %v1248_v58 }
  0xc8   : > { %1201 = vmatpush1.bf16.msra.mxu1 %v1200_v19 }
  0xc9   : > { %1203 = vmatprep.subr.bf16.mxu1 %v1202_v20 }
  0xcc   : > { %1205 = vmatpush1.bf16.msra.mxu1 %v1204_v25 }
  0xcd   : > { %1207 = vmatprep.subr.bf16.mxu1 %v1206_v26 }
  0xd0   : > { %1209 = vmatpush1.bf16.msra.mxu1 %v1208_v31 }
  0xd1   : > { %1211 = vmatprep.subr.bf16.mxu1 %v1210_v32 }
  0xd4   : > { %1213 = vmatpush1.bf16.msra.mxu1 %v1212_v37 }
  0xd5   : > { %1215 = vmatprep.subr.bf16.mxu1 %v1214_v38 }
  0xd8   : > { %1217 = vmatpush1.bf16.msra.mxu1 %v1216_v41 }
  0xdb   : > { %670 = vmatmul.mubr.f32.vlgmr.msra.gmra.mrb[4].mxu1 %v254_v43 }
 0x16e   : > { %v353_v59 = vpop.f32.mrb[0].mxu1 }
 0x16f   : > { %358 = vst [vmem:[%s1861_s11] sm:$0xff] %v353_v59  ;;  %v355_v60 = vpop.f32.mrb[1].mxu1 }
 0x170   : > { %359 = vst [vmem:[%s1861_s11 + $0x8] sm:$0xff] %v355_v60  ;;  %782 = vmatprep.mubr.f32.mxu0 %v355_v60 }
 0x171   : > { %783 = vmatmul.mubr.f32.vlgmr.msra.gmra.mrb[2].mxu0 %v353_v59 }
 0x178   : > { %v565_v61 = vpop.f32.mrb[0].mxu0 }
 0x179   : > { %570 = vst [vmem:[%s1861_s11 + $0x30] sm:$0xff] %v565_v61  ;;  %v567_v62 = vpop.f32.mrb[1].mxu0 }
 0x17a   : > { %571 = vst [vmem:[%s1861_s11 + $0x38] sm:$0xff] %v567_v62 }
 0x18e   : > { %v459_v63 = vpop.f32.mrb[2].mxu1 }
 0x18f   : > { %464 = vst [vmem:[%s1861_s11 + $0x18] sm:$0xff] %v459_v63  ;;  %v461_v1 = vpop.f32.mrb[3].mxu1 }
 0x190   : > { %465 = vst [vmem:[%s1861_s11 + $0x20] sm:$0xff] %v461_v1  ;;  %787 = vmatprep.mubr.f32.mxu0 %v461_v1 }
 0x191   : > { %788 = vmatmul.mubr.f32.gmra.mrb[4].mxu0 %v459_v63 }
 0x192   : > { %792 = vmatprep.mubr.f32.mxu0 %v567_v62 }
 0x195   : > { %793 = vmatmul.mubr.f32.gmra.mrb[6].mxu0 %v565_v61 }
 0x1ae   : > { %v671_v2 = vpop.f32.mrb[4].mxu1 }
 0x1af   : > { %676 = vst [vmem:[%s1861_s11 + $0x48] sm:$0xff] %v671_v2  ;;  %v673_v3 = vpop.f32.mrb[5].mxu1 }
 0x1b0   : > { %677 = vst [vmem:[%s1861_s11 + $0x50] sm:$0xff] %v673_v3  ;;  %797 = vmatprep.mubr.f32.mxu0 %v673_v3 }
 0x1b1   : > { %798 = vmatmul.mubr.f32.gmra.mrb[8].mxu0 %v671_v2 }
 0x244   : > { %v1078_v4 = vpop.f32.mrb[2].mxu0 }
 0x245   : > { %v1079_v5 = vpop.f32.mrb[3].mxu0 }
 0x246   : > { %v1080_v6 = vadd.f32 %v1079_v5, %v1078_v4 }
 0x248   : > { %803 = vst [vmem:[%s1861_s11 + $0x10] sm:$0xff] %v1080_v6 }
 0x264   : > { %v1081_v7 = vpop.f32.mrb[4].mxu0 }
 0x265   : > { %v1082_v8 = vpop.f32.mrb[5].mxu0 }
 0x266   : > { %v1083_v9 = vadd.f32 %v1082_v8, %v1081_v7 }
 0x268   : > { %804 = vst [vmem:[%s1861_s11 + $0x28] sm:$0xff] %v1083_v9  ;;  %v1084_v10 = vpop.f32.mrb[6].mxu0 }
 0x269   : > { %v1085_v11 = vpop.f32.mrb[7].mxu0 }
 0x26a   : > { %v1086_v12 = vadd.f32 %v1085_v11, %v1084_v10 }
 0x26c   : > { %805 = vst [vmem:[%s1861_s11 + $0x40] sm:$0xff] %v1086_v12 }
 0x284   : > { %v1087_v13 = vpop.f32.mrb[8].mxu0 }
 0x285   : > { %v1088_v14 = vpop.f32.mrb[9].mxu0 }
 0x286   : > { %v1089_v0 = vadd.f32 %v1088_v14, %v1087_v13 }
 0x288   : > { %806 = vst [vmem:[%s1861_s11 + $0x58] sm:$0xff] %v1089_v0 }
 0x289   : > { %1422 = shalt.err (!%p1419_p6)
}
 0x28a   : > { %s1423_s25 = scalar_lea.hbm %s1879_s6, 1536  ;;  %s1427_s20 = scalar_lea.hbm %s1929_s3, 3072 }
 0x28b   : > { %p1424_p8 = scmp.ne.s32.totalorder %s1879_s6, %s1423_s25  ;;  %p1428_p4 = scmp.lt.u32.totalorder %s1879_s6, %s1929_s3 }
 0x28c   : > { %p1429_p11 = scmp.lt.u32.totalorder %s1427_s20, %s1423_s25  ;;  %p1431_p3 = scmp.lt.u32.totalorder %s1423_s25, %s1879_s6 }
 0x28d   : > { %p1425_p10 = pnand %p1424_p8, %p1610_p12 }
 0x28e   : > { %p1430_p13 = por %p1429_p11, %p1428_p4 }
 0x28f   : > { %p1426_p0 = pneg %p1425_p10 }
 0x290   : > { %p1432_p7 = por %p1431_p3, %p1430_p13 }
 0x292   : > { %p1433_p9 = pnand %p1432_p7, %p1426_p0 }
 0x294   : > { %1436 = shalt.err (!%p1433_p9)
}
 0x295   : > { %s1494_s10 = smov 384   ;;  %s1495_s18 = smov 24  }
 0x296   : > { %1260 = dma.vmem_to_hbm [thread:$0]  (%p1610_p12), %s1881_s26, 1536, %s1879_s6, %s808_s7, %s1494_s10, %s1494_s10, %s1495_s18  }
 0x297 PF: > { %s837_s11 = sand.u32 1, %s1471_s12   ;;  %p1946_p1 = scmp.ne.s32.totalorder %s1935_s19, 0 }
 0x298   : > { %p1947_p5 = scmp.ge.s32.totalorder %s1483_s15, 2  ;;  %s838_s23 = scalar_lea.sflag [#allocation4], %s837_s11 }
 0x29a   : > { %p1274_p2 = pnand %p1947_p5, %p1946_p1 }
 0x29c   : > { %1466 = dma.done.wait (!%p1274_p2), %s838_s23, 1536  }
 0x29d   : > { %1468 = vsyncadd (!%p1274_p2), %s838_s23, 4294965760  ;;  %p19_p6 = scmp.ge.s32.totalorder %s1572_s24, 4   ;;  %s1948_s12 = smov %s1475_s13 }
 0x29e   : > { %s1949_s13 = smov %s1479_s14  ;;  %s1950_s14 = smov %s1606_s17 }
 0x29f   : > { %s1951_s15 = smov %s1572_s24  ;;  %21 = sbr.rel (!%p19_p6) target bundleno = 9 (0x9), region = 97 }
 0x2a6   :  { %843 = vsyncpa [#allocation3], 1 }
 0x2a7   :  { %845 = vsyncpa [#allocation3 + $0x1], 1 }
 0x2a8   :  { %846 = vsyncpa [#allocation6], 1 }
 0x2a9   :  { %848 = vsyncpa [#allocation6 + $0x1], 1 }
 0x2aa   :  { %849 = vsyncpa [#allocation4], 1 }
 0x2ab   :  { %851 = vsyncpa [#allocation4 + $0x1], 1 }

</bundles_post_ra>
